<compile_context>
chip_gen: v7x
topology: tpu7x:2x2x1
jax: 0.10.0
libtpu: 0.0.40
codegen_flags: <defaults>
</compile_context>

<pallas_src>
import jax
import jax.numpy as jnp
from jax.experimental import pallas as pl
from jax.experimental.pallas import tpu as pltpu

# ----- sizes from the PyTorch module ---------------------------------------
HIDDEN = 50
EXTERO = 4 * 52              # 208
EXT_PAD = 256                # lane-dense storage / output width for the extero stream
PRIV = 41
PRIV_PAD = 128               # lane-dense output width for the priviliged stream
L1 = 64                      # layer-1 width of every head
GA_L2, EXT_L2, PRIV_L2 = 128, 128, 64
F1 = 3 * L1                  # 192  fused layer-1 output width
F2 = GA_L2 + EXT_L2 + PRIV_L2    # 320  fused layer-2 output width
GAEXT_K = GA_L2 + EXT_L2     # 256  128-aligned K slice of a2 feeding the ga|ext layer-3
GAEXT_N = 2 * EXT_PAD        # 512  ga slab = cols [0,256), ext slab = cols [256,512)


# ----- math helpers (used inside the kernel and in the JAX reference) --------
def _elu(x):
    # ELU(alpha=1): x if x > 0 else exp(x) - 1
    return jnp.where(x > 0, x, jnp.exp(jnp.minimum(x, 0.0)) - 1.0)


def _mlp3(x, w1, b1, w2, b2, w3, b3):
    a = _elu(jnp.dot(x, w1, preferred_element_type=jnp.float32) + b1)
    a = _elu(jnp.dot(a, w2, preferred_element_type=jnp.float32) + b2)
    return jnp.dot(a, w3, preferred_element_type=jnp.float32) + b3


# ----- Pallas kernel ----------------------------------------------------------
def belief_decoder_kernel(
    h_ref, ext_ref,
    w1_ref, b1_ref, w2_ref, b2_ref,
    w3ge_ref, b3ge_ref, w3p_ref, b3p_ref,
    ext_out_ref, priv_out_ref,
):
    cdt = w1_ref.dtype                                   # MXU input dtype (bf16 or f32)
    h = h_ref[...].astype(cdt)                           # (tile, 50)

    # fused layer 1 (ga | extero_decoder | priv_decoder share the hidden input)
    a1 = _elu(jnp.dot(h, w1_ref[...], preferred_element_type=jnp.float32)
              + b1_ref[...])                             # (tile, 192) f32
    # fused block-diagonal layer 2
    a2 = _elu(jnp.dot(a1.astype(cdt), w2_ref[...], preferred_element_type=jnp.float32)
              + b2_ref[...])                             # (tile, 320) f32
    a2c = a2.astype(cdt)
    # TODO(synk): on v5e (128-wide MXU) split layer 2 into three per-head dots as well.

    # layer 3, split so the priviliged head does not drag mostly-zero MXU passes:
    #   ga|ext : (tile,256) @ (256,512) -> ga slab cols [0,256), ext slab cols [256,512)
    #   priv   : (tile, 64) @ ( 64,128) -> lane-dense 128-wide slab (valid cols [0,41))
    ge = (jnp.dot(a2c[:, :GAEXT_K], w3ge_ref[...], preferred_element_type=jnp.float32)
          + b3ge_ref[...])                               # (tile, 512) f32
    pv = (jnp.dot(a2c[:, GAEXT_K:], w3p_ref[...], preferred_element_type=jnp.float32)
          + b3p_ref[...])                                # (tile, 128) f32

    # alpha = sigmoid(ga(hidden)); residual add of attenuated exteroceptive input.
    # ext_ref cols 208..255 are zero (storage layout), so padded output cols stay 0.
    alpha = jax.nn.sigmoid(ge[:, :EXT_PAD])              # (tile, 256)
    ext_out_ref[...] = ge[:, EXT_PAD:] + alpha * ext_ref[...]   # lane-dense 256 store
    priv_out_ref[...] = pv                                       # lane-dense 128 store


# ----- wrapper ----------------------------------------------------------------
def fuse_params(p, dtype=jnp.bfloat16):
    """Build the fused weights once (wrapper-side, one-time cost).

    dtype=bf16 is the recommended storage/compute dtype on v6e/v7x (MXU-native);
    use dtype=jnp.float32 for bit-compatibility with the f32 reference.
    """
    # layer 1: concat along the output axis (shared 50-wide input)
    w1 = jnp.concatenate([p["ga_w1"], p["ext_w1"], p["priv_w1"]], axis=1).astype(dtype)
    b1 = jnp.concatenate([p["ga_b1"], p["ext_b1"], p["priv_b1"]], axis=1)   # (1,192) f32

    # layer 2: block diagonal (zero blocks contribute exact zeros)
    w2 = jnp.zeros((F1, F2), jnp.float32)
    w2 = w2.at[0:L1, 0:GA_L2].set(p["ga_w2"])
    w2 = w2.at[L1:2 * L1, GA_L2:GA_L2 + EXT_L2].set(p["ext_w2"])
    w2 = w2.at[2 * L1:F1, GA_L2 + EXT_L2:F2].set(p["priv_w2"])
    w2 = w2.astype(dtype)
    b2 = jnp.concatenate([p["ga_b2"], p["ext_b2"], p["priv_b2"]], axis=1)   # (1,320) f32

    # layer 3a (ga | ext fused): lane-dense 256-wide column slabs
    w3ge = jnp.zeros((GAEXT_K, GAEXT_N), jnp.float32)
    w3ge = w3ge.at[0:GA_L2, 0:EXTERO].set(p["ga_w3"])
    w3ge = w3ge.at[GA_L2:GAEXT_K, EXT_PAD:EXT_PAD + EXTERO].set(p["ext_w3"])
    w3ge = w3ge.astype(dtype)
    b3ge = jnp.zeros((1, GAEXT_N), jnp.float32)
    b3ge = b3ge.at[:, 0:EXTERO].set(p["ga_b3"])
    b3ge = b3ge.at[:, EXT_PAD:EXT_PAD + EXTERO].set(p["ext_b3"])

    # layer 3b (priv): padded to a lane-dense 128-wide slab
    w3p = jnp.zeros((PRIV_L2, PRIV_PAD), jnp.float32)
    w3p = w3p.at[:, 0:PRIV].set(p["priv_w3"]).astype(dtype)
    b3p = jnp.zeros((1, PRIV_PAD), jnp.float32).at[:, 0:PRIV].set(p["priv_b3"])

    return {"w1": w1, "b1": b1, "w2": w2, "b2": b2,
            "w3ge": w3ge, "b3ge": b3ge, "w3p": w3p, "b3p": b3p}


def _choose_tile(n8, tile_n):
    """Largest batch tile (multiple of 8, <= tile_n) that divides n8.

    Prefers >= 2 grid steps so double-buffering works and the "parallel" batch axis
    can shard across v7x's two TensorCores.
    """
    cap = min(tile_n, n8)
    if n8 >= 16:
        cap = min(cap, max(8, (n8 // 2) // 8 * 8))
    for t in range(cap, 7, -8):
        if n8 % t == 0:
            return t
    return 8


def _plan_batch(n, tile_n):
    """Return (n_pad, tile); avoids wrapper-side pad copies whenever possible."""
    n8 = ((n + 7) // 8) * 8          # sublane (8) alignment is unavoidable
    tile = _choose_tile(n8, tile_n)
    if tile < 256 and n8 > 4 * tile_n:
        # No decent divisor exists: one pad copy beats hundreds of tiny grid steps.
        tile = tile_n
        n8 = ((n + tile - 1) // tile) * tile
    return n8, tile


def belief_decoder_forward(hidden, extero, fused, *, tile_n=1024):
    """hidden: (N, 50) f32; extero: (N, 208) or lane-dense (N, 256) zero-tail storage.

    Returns (extero_decoded (N, 208), priviliged_decoded (N, 41)).
    """
    n = hidden.shape[0]
    tile_n = max(8, (tile_n // 8) * 8)

    # Lane-dense exteroceptive storage: best is to keep extero as (N, 256) with a zero
    # tail in the caller; a (N, 208) input is accepted at the cost of one pad copy.
    if extero.shape[1] == EXTERO:
        extero = jnp.pad(extero, ((0, 0), (0, EXT_PAD - EXTERO)))
    assert extero.shape[1] == EXT_PAD

    n_pad, tile = _plan_batch(n, tile_n)
    if n_pad != n:
        hidden = jnp.pad(hidden, ((0, n_pad - n), (0, 0)))
        extero = jnp.pad(extero, ((0, n_pad - n), (0, 0)))
    grid = (n_pad // tile,)

    def row_spec(feat):
        # TODO(synk): sweep pipeline_mode=pl.Buffered(3) here if profiles show exposed DMA.
        return pl.BlockSpec((tile, feat), lambda i: (i, 0))

    def const_spec(arr):
        # full-array block, constant index -> weights stay VMEM-resident across the grid
        return pl.BlockSpec(arr.shape, lambda i: (0, 0))

    w1, b1, w2, b2 = fused["w1"], fused["b1"], fused["w2"], fused["b2"]
    w3ge, b3ge, w3p, b3p = fused["w3ge"], fused["b3ge"], fused["w3p"], fused["b3p"]

    ext_slab, priv_slab = pl.pallas_call(
        belief_decoder_kernel,
        grid=grid,
        in_specs=[
            row_spec(HIDDEN), row_spec(EXT_PAD),
            const_spec(w1), const_spec(b1),
            const_spec(w2), const_spec(b2),
            const_spec(w3ge), const_spec(b3ge),
            const_spec(w3p), const_spec(b3p),
        ],
        out_specs=(
            pl.BlockSpec((tile, EXT_PAD), lambda i: (i, 0)),
            pl.BlockSpec((tile, PRIV_PAD), lambda i: (i, 0)),
        ),
        out_shape=(
            jax.ShapeDtypeStruct((n_pad, EXT_PAD), jnp.float32),
            jax.ShapeDtypeStruct((n_pad, PRIV_PAD), jnp.float32),
        ),
        compiler_params=pltpu.CompilerParams(dimension_semantics=("parallel",)),
    )(hidden, extero, w1, b1, w2, b2, w3ge, b3ge, w3p, b3p)

    # Trailing slices (pad columns are exact zeros); fuse into the consumer in real use.
    ext_dec = ext_slab[:n, :EXTERO]
    priv_dec = priv_slab[:n, :PRIV]
    return ext_dec, priv_dec


# ----- deterministic parameter init (PyTorch-default-style uniform) ------------
def init_params(key):
    def u(k, shape, fan_in):
        bound = 1.0 / float(fan_in) ** 0.5
        return jax.random.uniform(k, shape, jnp.float32, -bound, bound)

    keys = iter(jax.random.split(key, 18))
    p = {}
    # ga: 50 -> 64 -> 128 -> 208
    p["ga_w1"] = u(next(keys), (HIDDEN, L1), HIDDEN)
    p["ga_b1"] = u(next(keys), (1, L1), HIDDEN)
    p["ga_w2"] = u(next(keys), (L1, GA_L2), L1)
    p["ga_b2"] = u(next(keys), (1, GA_L2), L1)
    p["ga_w3"] = u(next(keys), (GA_L2, EXTERO), GA_L2)
    p["ga_b3"] = u(next(keys), (1, EXTERO), GA_L2)
    # exteroceptive_decoder: 50 -> 64 -> 128 -> 208
    p["ext_w1"] = u(next(keys), (HIDDEN, L1), HIDDEN)
    p["ext_b1"] = u(next(keys), (1, L1), HIDDEN)
    p["ext_w2"] = u(next(keys), (L1, EXT_L2), L1)
    p["ext_b2"] = u(next(keys), (1, EXT_L2), L1)
    p["ext_w3"] = u(next(keys), (EXT_L2, EXTERO), EXT_L2)
    p["ext_b3"] = u(next(keys), (1, EXTERO), EXT_L2)
    # priviliged_decoder: 50 -> 64 -> 64 -> 41
    p["priv_w1"] = u(next(keys), (HIDDEN, L1), HIDDEN)
    p["priv_b1"] = u(next(keys), (1, L1), HIDDEN)
    p["priv_w2"] = u(next(keys), (L1, PRIV_L2), L1)
    p["priv_b2"] = u(next(keys), (1, PRIV_L2), L1)
    p["priv_w3"] = u(next(keys), (PRIV_L2, PRIV), PRIV_L2)
    p["priv_b3"] = u(next(keys), (1, PRIV), PRIV_L2)
    return p


# ----- pure-JAX reference (unfused, same math as the PyTorch module) -----------
def reference_forward(hidden, extero, p):
    alpha = jax.nn.sigmoid(_mlp3(hidden, p["ga_w1"], p["ga_b1"], p["ga_w2"],
                                 p["ga_b2"], p["ga_w3"], p["ga_b3"]))
    ext_att = alpha * extero
    ext_dec = _mlp3(hidden, p["ext_w1"], p["ext_b1"], p["ext_w2"], p["ext_b2"],
                    p["ext_w3"], p["ext_b3"]) + ext_att
    priv_dec = _mlp3(hidden, p["priv_w1"], p["priv_b1"], p["priv_w2"],
                     p["priv_b2"], p["priv_w3"], p["priv_b3"])
    return ext_dec, priv_dec


if __name__ == "__main__":
    key = jax.random.PRNGKey(0)
    k_par, k_hid, k_ext = jax.random.split(key, 3)

    n_envs = 8
    params = init_params(k_par)
    hidden = jax.random.normal(k_hid, (n_envs, HIDDEN), jnp.float32)
    extero = jax.random.normal(k_ext, (n_envs, EXTERO), jnp.float32)
    # recommended lane-dense storage layout for the exteroceptive stream
    extero_store = jnp.zeros((n_envs, EXT_PAD), jnp.float32).at[:, :EXTERO].set(extero)

    ref_ext, ref_priv = reference_forward(hidden, extero, params)

    # f32 weights: bit-level-ish check against the unfused reference (exercises the
    # 208-wide extero input + pad path).
    fused_f32 = fuse_params(params, dtype=jnp.float32)
    ext32, priv32 = jax.block_until_ready(
        belief_decoder_forward(hidden, extero, fused_f32))
    assert ext32.shape == (n_envs, EXTERO) and priv32.shape == (n_envs, PRIV)
    assert jnp.allclose(ext32, ref_ext, atol=1e-4), float(jnp.max(jnp.abs(ext32 - ref_ext)))
    assert jnp.allclose(priv32, ref_priv, atol=1e-4), float(jnp.max(jnp.abs(priv32 - ref_priv)))

    # bf16 weights/activations (recommended on v6e/v7x): looser tolerance, lane-dense
    # 256-wide extero storage path (no wrapper-side pad).
    fused_bf16 = fuse_params(params, dtype=jnp.bfloat16)
    ext16, priv16 = jax.block_until_ready(
        belief_decoder_forward(hidden, extero_store, fused_bf16))
    assert ext16.shape == (n_envs, EXTERO) and priv16.shape == (n_envs, PRIV)
    assert jnp.allclose(ext16, ref_ext, atol=1e-1), float(jnp.max(jnp.abs(ext16 - ref_ext)))
    assert jnp.allclose(priv16, ref_priv, atol=1e-1), float(jnp.max(jnp.abs(priv16 - ref_priv)))

    print("KERNEL_OK")
</pallas_src>

<mosaic_0001>
module attributes {stable_mosaic.version = 11 : i64} {
  func.func @belief_decoder_kernel(%arg0: i32, %arg1: memref<8x50xf32, #tpu.memory_space<vmem>>, %arg2: memref<8x256xf32, #tpu.memory_space<vmem>>, %arg3: memref<50x192xf32, #tpu.memory_space<vmem>>, %arg4: memref<1x192xf32, #tpu.memory_space<vmem>>, %arg5: memref<192x320xf32, #tpu.memory_space<vmem>>, %arg6: memref<1x320xf32, #tpu.memory_space<vmem>>, %arg7: memref<256x512xf32, #tpu.memory_space<vmem>>, %arg8: memref<1x512xf32, #tpu.memory_space<vmem>>, %arg9: memref<64x128xf32, #tpu.memory_space<vmem>>, %arg10: memref<1x128xf32, #tpu.memory_space<vmem>>, %arg11: memref<8x256xf32, #tpu.memory_space<vmem>>, %arg12: memref<8x128xf32, #tpu.memory_space<vmem>>) attributes {dimension_semantics = [#tpu.dimension_semantics<parallel>], iteration_bounds = array<i64: 1>, scalar_prefetch = 0 : i64, scratch_operands = 0 : i64, tpu.core_type = #tpu.core_type<tc>, window_params = [{transform_indices = @transform_0, window_bounds = array<i64: 8, 50>}, {transform_indices = @transform_1, window_bounds = array<i64: 8, 256>}, {pipeline_mode = #tpu.pipeline_mode<synchronous>, transform_indices = @transform_2, window_bounds = array<i64: 50, 192>}, {pipeline_mode = #tpu.pipeline_mode<synchronous>, transform_indices = @transform_3, window_bounds = array<i64: 1, 192>}, {pipeline_mode = #tpu.pipeline_mode<synchronous>, transform_indices = @transform_4, window_bounds = array<i64: 192, 320>}, {pipeline_mode = #tpu.pipeline_mode<synchronous>, transform_indices = @transform_5, window_bounds = array<i64: 1, 320>}, {pipeline_mode = #tpu.pipeline_mode<synchronous>, transform_indices = @transform_6, window_bounds = array<i64: 256, 512>}, {pipeline_mode = #tpu.pipeline_mode<synchronous>, transform_indices = @transform_7, window_bounds = array<i64: 1, 512>}, {pipeline_mode = #tpu.pipeline_mode<synchronous>, transform_indices = @transform_8, window_bounds = array<i64: 64, 128>}, {pipeline_mode = #tpu.pipeline_mode<synchronous>, transform_indices = @transform_9, window_bounds = array<i64: 1, 128>}, {transform_indices = @transform_10, window_bounds = array<i64: 8, 256>}, {transform_indices = @transform_11, window_bounds = array<i64: 8, 128>}]} {
    %c0 = arith.constant 0 : index
    %c0_0 = arith.constant 0 : index
    %0 = vector.load %arg1[%c0, %c0_0] : memref<8x50xf32, #tpu.memory_space<vmem>>, vector<8x50xf32>
    %c0_1 = arith.constant 0 : index
    %c0_2 = arith.constant 0 : index
    %1 = vector.load %arg3[%c0_1, %c0_2] : memref<50x192xf32, #tpu.memory_space<vmem>>, vector<50x192xf32>
    %cst = arith.constant dense<0.000000e+00> : vector<8x192xf32>
    %2 = tpu.matmul %0, %1, %cst {dimension_numbers = #tpu.dot_dimension_numbers<[1], [0], [0], [1], [0, 0, 1, 1], [], []>} : vector<8x50xf32>, vector<50x192xf32>, vector<8x192xf32> -> vector<8x192xf32>
    %c0_3 = arith.constant 0 : index
    %c0_4 = arith.constant 0 : index
    %3 = vector.load %arg4[%c0_3, %c0_4] : memref<1x192xf32, #tpu.memory_space<vmem>>, vector<1x192xf32>
    %4 = vector.broadcast %3 : vector<1x192xf32> to vector<8x192xf32>
    %5 = arith.addf %2, %4 : vector<8x192xf32>
    %cst_5 = arith.constant 0.000000e+00 : f32
    %6 = vector.broadcast %cst_5 : f32 to vector<8x192xf32>
    %7 = arith.cmpf ogt, %5, %6 : vector<8x192xf32>
    %cst_6 = arith.constant 0.000000e+00 : f32
    %8 = vector.broadcast %cst_6 : f32 to vector<8x192xf32>
    %9 = arith.minimumf %5, %8 : vector<8x192xf32>
    %10 = math.exp %9 : vector<8x192xf32>
    %cst_7 = arith.constant 1.000000e+00 : f32
    %11 = vector.broadcast %cst_7 : f32 to vector<8x192xf32>
    %12 = arith.subf %10, %11 : vector<8x192xf32>
    %13 = arith.select %7, %5, %12 : vector<8x192xi1>, vector<8x192xf32>
    %c0_8 = arith.constant 0 : index
    %c0_9 = arith.constant 0 : index
    %14 = vector.load %arg5[%c0_8, %c0_9] : memref<192x320xf32, #tpu.memory_space<vmem>>, vector<192x320xf32>
    %cst_10 = arith.constant dense<0.000000e+00> : vector<8x320xf32>
    %15 = tpu.matmul %13, %14, %cst_10 {dimension_numbers = #tpu.dot_dimension_numbers<[1], [0], [0], [1], [0, 0, 1, 1], [], []>} : vector<8x192xf32>, vector<192x320xf32>, vector<8x320xf32> -> vector<8x320xf32>
    %c0_11 = arith.constant 0 : index
    %c0_12 = arith.constant 0 : index
    %16 = vector.load %arg6[%c0_11, %c0_12] : memref<1x320xf32, #tpu.memory_space<vmem>>, vector<1x320xf32>
    %17 = vector.broadcast %16 : vector<1x320xf32> to vector<8x320xf32>
    %18 = arith.addf %15, %17 : vector<8x320xf32>
    %cst_13 = arith.constant 0.000000e+00 : f32
    %19 = vector.broadcast %cst_13 : f32 to vector<8x320xf32>
    %20 = arith.cmpf ogt, %18, %19 : vector<8x320xf32>
    %cst_14 = arith.constant 0.000000e+00 : f32
    %21 = vector.broadcast %cst_14 : f32 to vector<8x320xf32>
    %22 = arith.minimumf %18, %21 : vector<8x320xf32>
    %23 = math.exp %22 : vector<8x320xf32>
    %cst_15 = arith.constant 1.000000e+00 : f32
    %24 = vector.broadcast %cst_15 : f32 to vector<8x320xf32>
    %25 = arith.subf %23, %24 : vector<8x320xf32>
    %26 = arith.select %20, %18, %25 : vector<8x320xi1>, vector<8x320xf32>
    %27 = vector.extract_strided_slice %26 {offsets = [0, 0], sizes = [8, 256], strides = [1, 1]} : vector<8x320xf32> to vector<8x256xf32>
    %c0_16 = arith.constant 0 : index
    %c0_17 = arith.constant 0 : index
    %28 = vector.load %arg7[%c0_16, %c0_17] : memref<256x512xf32, #tpu.memory_space<vmem>>, vector<256x512xf32>
    %cst_18 = arith.constant dense<0.000000e+00> : vector<8x512xf32>
    %29 = tpu.matmul %27, %28, %cst_18 {dimension_numbers = #tpu.dot_dimension_numbers<[1], [0], [0], [1], [0, 0, 1, 1], [], []>} : vector<8x256xf32>, vector<256x512xf32>, vector<8x512xf32> -> vector<8x512xf32>
    %c0_19 = arith.constant 0 : index
    %c0_20 = arith.constant 0 : index
    %30 = vector.load %arg8[%c0_19, %c0_20] : memref<1x512xf32, #tpu.memory_space<vmem>>, vector<1x512xf32>
    %31 = vector.broadcast %30 : vector<1x512xf32> to vector<8x512xf32>
    %32 = arith.addf %29, %31 : vector<8x512xf32>
    %33 = vector.extract_strided_slice %26 {offsets = [0, 256], sizes = [8, 64], strides = [1, 1]} : vector<8x320xf32> to vector<8x64xf32>
    %c0_21 = arith.constant 0 : index
    %c0_22 = arith.constant 0 : index
    %34 = vector.load %arg9[%c0_21, %c0_22] : memref<64x128xf32, #tpu.memory_space<vmem>>, vector<64x128xf32>
    %cst_23 = arith.constant dense<0.000000e+00> : vector<8x128xf32>
    %35 = tpu.matmul %33, %34, %cst_23 {dimension_numbers = #tpu.dot_dimension_numbers<[1], [0], [0], [1], [0, 0, 1, 1], [], []>} : vector<8x64xf32>, vector<64x128xf32>, vector<8x128xf32> -> vector<8x128xf32>
    %c0_24 = arith.constant 0 : index
    %c0_25 = arith.constant 0 : index
    %36 = vector.load %arg10[%c0_24, %c0_25] : memref<1x128xf32, #tpu.memory_space<vmem>>, vector<1x128xf32>
    %37 = vector.broadcast %36 : vector<1x128xf32> to vector<8x128xf32>
    %38 = arith.addf %35, %37 : vector<8x128xf32>
    %39 = vector.extract_strided_slice %32 {offsets = [0, 0], sizes = [8, 256], strides = [1, 1]} : vector<8x512xf32> to vector<8x256xf32>
    %40 = arith.negf %39 : vector<8x256xf32>
    %41 = math.exp %40 : vector<8x256xf32>
    %cst_26 = arith.constant 1.000000e+00 : f32
    %42 = vector.broadcast %cst_26 : f32 to vector<8x256xf32>
    %43 = arith.addf %42, %41 : vector<8x256xf32>
    %44 = arith.divf %42, %43 : vector<8x256xf32>
    %45 = vector.extract_strided_slice %32 {offsets = [0, 256], sizes = [8, 256], strides = [1, 1]} : vector<8x512xf32> to vector<8x256xf32>
    %c0_27 = arith.constant 0 : index
    %c0_28 = arith.constant 0 : index
    %46 = vector.load %arg2[%c0_27, %c0_28] : memref<8x256xf32, #tpu.memory_space<vmem>>, vector<8x256xf32>
    %47 = arith.mulf %44, %46 : vector<8x256xf32>
    %48 = arith.addf %45, %47 : vector<8x256xf32>
    %c0_29 = arith.constant 0 : index
    %c0_30 = arith.constant 0 : index
    %49 = vector.load %arg11[%c0_29, %c0_30] : memref<8x256xf32, #tpu.memory_space<vmem>>, vector<8x256xf32>
    tpu.vector_store %arg11[%c0_29, %c0_30], %48 {strides = array<i32>} : memref<8x256xf32, #tpu.memory_space<vmem>>, vector<8x256xf32>,
    %c0_31 = arith.constant 0 : index
    %c0_32 = arith.constant 0 : index
    %50 = vector.load %arg12[%c0_31, %c0_32] : memref<8x128xf32, #tpu.memory_space<vmem>>, vector<8x128xf32>
    tpu.vector_store %arg12[%c0_31, %c0_32], %38 {strides = array<i32>} : memref<8x128xf32, #tpu.memory_space<vmem>>, vector<8x128xf32>,
    return
  }
  func.func @transform_0(%arg0: i32) -> (i32, i32) {
    %c0_i32 = arith.constant 0 : i32
    %c0_i32_0 = arith.constant 0 : i32
    return %arg0, %c0_i32 : i32, i32
  }
  func.func @transform_1(%arg0: i32) -> (i32, i32) {
    %c0_i32 = arith.constant 0 : i32
    %c0_i32_0 = arith.constant 0 : i32
    return %arg0, %c0_i32 : i32, i32
  }
  func.func @transform_2(%arg0: i32) -> (i32, i32) {
    %c0_i32 = arith.constant 0 : i32
    %c0_i32_0 = arith.constant 0 : i32
    %c0_i32_1 = arith.constant 0 : i32
    return %c0_i32, %c0_i32_0 : i32, i32
  }
  func.func @transform_3(%arg0: i32) -> (i32, i32) {
    %c0_i32 = arith.constant 0 : i32
    %c0_i32_0 = arith.constant 0 : i32
    %c0_i32_1 = arith.constant 0 : i32
    return %c0_i32, %c0_i32_0 : i32, i32
  }
  func.func @transform_4(%arg0: i32) -> (i32, i32) {
    %c0_i32 = arith.constant 0 : i32
    %c0_i32_0 = arith.constant 0 : i32
    %c0_i32_1 = arith.constant 0 : i32
    return %c0_i32, %c0_i32_0 : i32, i32
  }
  func.func @transform_5(%arg0: i32) -> (i32, i32) {
    %c0_i32 = arith.constant 0 : i32
    %c0_i32_0 = arith.constant 0 : i32
    %c0_i32_1 = arith.constant 0 : i32
    return %c0_i32, %c0_i32_0 : i32, i32
  }
  func.func @transform_6(%arg0: i32) -> (i32, i32) {
    %c0_i32 = arith.constant 0 : i32
    %c0_i32_0 = arith.constant 0 : i32
    %c0_i32_1 = arith.constant 0 : i32
    return %c0_i32, %c0_i32_0 : i32, i32
  }
  func.func @transform_7(%arg0: i32) -> (i32, i32) {
    %c0_i32 = arith.constant 0 : i32
    %c0_i32_0 = arith.constant 0 : i32
    %c0_i32_1 = arith.constant 0 : i32
    return %c0_i32, %c0_i32_0 : i32, i32
  }
  func.func @transform_8(%arg0: i32) -> (i32, i32) {
    %c0_i32 = arith.constant 0 : i32
    %c0_i32_0 = arith.constant 0 : i32
    %c0_i32_1 = arith.constant 0 : i32
    return %c0_i32, %c0_i32_0 : i32, i32
  }
  func.func @transform_9(%arg0: i32) -> (i32, i32) {
    %c0_i32 = arith.constant 0 : i32
    %c0_i32_0 = arith.constant 0 : i32
    %c0_i32_1 = arith.constant 0 : i32
    return %c0_i32, %c0_i32_0 : i32, i32
  }
  func.func @transform_10(%arg0: i32) -> (i32, i32) {
    %c0_i32 = arith.constant 0 : i32
    %c0_i32_0 = arith.constant 0 : i32
    return %arg0, %c0_i32 : i32, i32
  }
  func.func @transform_11(%arg0: i32) -> (i32, i32) {
    %c0_i32 = arith.constant 0 : i32
    %c0_i32_0 = arith.constant 0 : i32
    return %arg0, %c0_i32 : i32, i32
  }
}

</mosaic_0001>

<bundles_post_ra>
// kernel: tpu_custom_call.1
= control target key start
LH: loop header
LB: loop body
LE: loop exit
PB: predicated region body
PF: predicated region fallthrough
CT: control target
= control target key end

     0   :  { %17 = vsyncpa [#allocation3], 0  ;;  %s1670_s0 = inlined_call_operand.hbm [shape: f32[8,50], index: 0, kind: input, shape index: {}]   ;;  %s1671_s1 = inlined_call_operand.hbm [shape: f32[8,256], index: 1, kind: input, shape index: {}]   ;;  %s1672_s2 = inlined_call_operand.hbm [shape: f32[50,192], index: 2, kind: input, shape index: {}]   ;;  %s1673_s3 = inlined_call_operand.vmem [shape: f32[1,192], index: 3, kind: input, shape index: {}]   ;;  %s1674_s4 = inlined_call_operand.hbm [shape: f32[192,320], index: 4, kind: input, shape index: {}]   ;;  %s1675_s5 = inlined_call_operand.vmem [shape: f32[1,320], index: 5, kind: input, shape index: {}]   ;;  %s1676_s6 = inlined_call_operand.hbm [shape: f32[256,512], index: 6, kind: input, shape index: {}]   ;;  %s1677_s7 = inlined_call_operand.vmem [shape: f32[1,512], index: 7, kind: input, shape index: {}]   ;;  %s1678_s8 = inlined_call_operand.hbm [shape: f32[64,128], index: 8, kind: input, shape index: {}]   ;;  %s1679_s9 = inlined_call_operand.vmem [shape: f32[1,128], index: 9, kind: input, shape index: {}]   ;;  %s1680_s10 = inlined_call_operand.hbm [shape: f32[8,256], index: 10, kind: output, shape index: {0}]   ;;  %s1681_s11 = inlined_call_operand.hbm [shape: f32[8,128], index: 11, kind: output, shape index: {1}]  }
   0x1   :  { %18 = vsyncpa [#allocation6], 0 }
   0x2   :  { %19 = vsyncpa [#allocation9], 0 }
   0x3   :  { %20 = vsyncpa [#allocation12], 0 }
   0x4   :  { %21 = vsyncpa [#allocation4], 0 }
   0x5   :  { %22 = vsyncpa [#allocation15], 0  ;;  %s1426_s17 = smov [#allocation5]   ;;  %s1427_s19 = smov [#allocation8]  }
   0x6   :  { %s39_s18 = sshll.u32 %s1426_s17, 4  ;;  %s62_s20 = sshll.u32 %s1427_s19, 4  ;;  %s40_s18 = int_to_ptr.vmem [resolvable:$true] %s39_s18  ;;  %s1505_s20 = int_to_ptr.vmem [resolvable:$true] %s62_s20 }
   0x7   :  { %s1238_s23 = scalar_lea.hbm %s1671_s1, 256 }
   0x8   :  { %p1239_p0 = scmp.ne.s32.totalorder %s1671_s1, %s1238_s23  ;;  %p1242_p1 = scmp.lt.u32.totalorder %s1238_s23, %s1671_s1 }
   0xa   :  { %p1244_p2 = pnand %p1242_p1, %p1239_p0 }
   0xc   :  { %1247 = shalt.err (!%p1244_p2)
}
   0xd   :  { %s1248_s28 = scalar_lea.vmem %s40_s18, 256  ;;  %p1253_p4 = scmp.lt.s32.totalorder %s40_s18, %s40_s18 }
   0xe   :  { %p1249_p3 = scmp.ne.s32.totalorder %s40_s18, %s1248_s28  ;;  %p1254_p5 = scmp.lt.s32.totalorder %s1248_s28, %s1248_s28 }
  0x10   :  { %p1255_p6 = por %p1254_p5, %p1253_p4 }
  0x12   :  { %p1256_p7 = pnand %p1255_p6, %p1249_p3 }
  0x14   :  { %1259 = shalt.err (!%p1256_p7)
}
  0x15   :  { %42 = dma.hbm_to_vmem [thread:$0]  %s1671_s1, 256, %s40_s18, [#allocation6]  }
  0x16   :  { %s1260_s14 = scalar_lea.hbm %s1674_s4, 9216 }
  0x17   :  { %p1261_p8 = scmp.ne.s32.totalorder %s1674_s4, %s1260_s14  ;;  %p1264_p9 = scmp.lt.u32.totalorder %s1260_s14, %s1674_s4 }
  0x19   :  { %p1266_p10 = pnand %p1264_p9, %p1261_p8 }
  0x1b   :  { %1269 = shalt.err (!%p1266_p10)
}
  0x1c   :  { %s1270_s21 = scalar_lea.vmem %s1505_s20, 9216  ;;  %p1275_p12 = scmp.lt.s32.totalorder %s1505_s20, %s1505_s20 }
  0x1d   :  { %p1271_p11 = scmp.ne.s32.totalorder %s1505_s20, %s1270_s21  ;;  %p1276_p13 = scmp.lt.s32.totalorder %s1270_s21, %s1270_s21 }
  0x1f   :  { %p1277_p0 = por %p1276_p13, %p1275_p12 }
  0x21   :  { %p1278_p1 = pnand %p1277_p0, %p1271_p11 }
  0x23   :  { %1281 = shalt.err (!%p1278_p1)
}
  0x24   :  { %s1428_s1 = smov 384   ;;  %s1429_s18 = smov 24  }
  0x25   :  { %68 = dma.hbm_to_vmem [thread:$0]  %s1674_s4, 9216, %s1505_s20, [#allocation9], %s1428_s1, %s1428_s1, %s1429_s18  }
  0x26   :  { %s1430_s24 = smov [#allocation2]   ;;  %s1431_s26 = smov [#allocation7]  }
  0x27   :  { %s29_s25 = sshll.u32 %s1430_s24, 4  ;;  %s48_s27 = sshll.u32 %s1431_s26, 4  ;;  %s30_s25 = int_to_ptr.vmem [resolvable:$true] %s29_s25  ;;  %s1536_s27 = int_to_ptr.vmem [resolvable:$true] %s48_s27 }
  0x28   :  { %s1282_s30 = scalar_lea.hbm %s1670_s0, 128 }
  0x29   :  { %p1283_p2 = scmp.ne.s32.totalorder %s1670_s0, %s1282_s30  ;;  %p1286_p3 = scmp.lt.u32.totalorder %s1282_s30, %s1670_s0 }
  0x2b   :  { %p1288_p4 = pnand %p1286_p3, %p1283_p2 }
  0x2d   :  { %1291 = shalt.err (!%p1288_p4)
}
  0x2e   :  { %s1292_s4 = scalar_lea.vmem %s30_s25, 128  ;;  %p1297_p6 = scmp.lt.s32.totalorder %s30_s25, %s30_s25 }
  0x2f   :  { %p1293_p5 = scmp.ne.s32.totalorder %s30_s25, %s1292_s4  ;;  %p1298_p7 = scmp.lt.s32.totalorder %s1292_s4, %s1292_s4 }
  0x31   :  { %p1299_p8 = por %p1298_p7, %p1297_p6 }
  0x33   :  { %p1300_p9 = pnand %p1299_p8, %p1293_p5 }
  0x35   :  { %1303 = shalt.err (!%p1300_p9)
}
  0x36   :  { %32 = dma.hbm_to_vmem [thread:$0]  %s1670_s0, 128, %s30_s25, [#allocation3]  }
  0x37   :  { %s1304_s21 = scalar_lea.hbm %s1672_s2, 1792 }
  0x38   :  { %p1305_p10 = scmp.ne.s32.totalorder %s1672_s2, %s1304_s21  ;;  %p1308_p11 = scmp.lt.u32.totalorder %s1304_s21, %s1672_s2 }
  0x3a   :  { %p1310_p12 = pnand %p1308_p11, %p1305_p10 }
  0x3c   :  { %1313 = shalt.err (!%p1310_p12)
}
  0x3d   :  { %s1314_s24 = scalar_lea.vmem %s1536_s27, 1792  ;;  %p1319_p0 = scmp.lt.s32.totalorder %s1536_s27, %s1536_s27 }
  0x3e   :  { %p1315_p13 = scmp.ne.s32.totalorder %s1536_s27, %s1314_s24  ;;  %p1320_p1 = scmp.lt.s32.totalorder %s1314_s24, %s1314_s24 }
  0x40   :  { %p1321_p2 = por %p1320_p1, %p1319_p0 }
  0x42   :  { %p1322_p3 = pnand %p1321_p2, %p1315_p13 }
  0x44   :  { %1325 = shalt.err (!%p1322_p3)
}
  0x45   :  { %s1432_s0 = smov 256   ;;  %s1433_s25 = smov 16  }
  0x46   :  { %54 = dma.hbm_to_vmem [thread:$0]  %s1672_s2, 1792, %s1536_s27, [#allocation6], %s1432_s0, %s1432_s0, %s1433_s25  }
  0x47   :  { %s1434_s29 = smov [#allocation10]   ;;  %s1326_s14 = scalar_lea.hbm %s1676_s6, 16384 }
  0x48   :  { %s76_s30 = sshll.u32 %s1434_s29, 4  ;;  %p1327_p4 = scmp.ne.s32.totalorder %s1676_s6, %s1326_s14  ;;  %s77_s30 = int_to_ptr.vmem [resolvable:$true] %s76_s30 }
  0x49   :  { %p1330_p5 = scmp.lt.u32.totalorder %s1326_s14, %s1676_s6 }
  0x4b   :  { %p1332_p6 = pnand %p1330_p5, %p1327_p4 }
  0x4d   :  { %1335 = shalt.err (!%p1332_p6)
}
  0x4e   :  { %s1336_s17 = scalar_lea.vmem %s77_s30, 16384  ;;  %p1341_p8 = scmp.lt.s32.totalorder %s77_s30, %s77_s30 }
  0x4f   :  { %p1337_p7 = scmp.ne.s32.totalorder %s77_s30, %s1336_s17  ;;  %p1342_p9 = scmp.lt.s32.totalorder %s1336_s17, %s1336_s17 }
  0x51   :  { %p1343_p10 = por %p1342_p9, %p1341_p8 }
  0x53   :  { %p1344_p11 = pnand %p1343_p10, %p1337_p7 }
  0x55   :  { %1347 = shalt.err (!%p1344_p11)
}
  0x56   :  { %s1435_s2 = smov 512   ;;  %s1436_s27 = smov 32  }
  0x57   :  { %82 = dma.hbm_to_vmem [thread:$0]  %s1676_s6, 16384, %s77_s30, [#allocation9], %s1435_s2, %s1435_s2, %s1436_s27  }
  0x58   :  { %s1437_s1 = smov [#allocation11]   ;;  %s1348_s24 = scalar_lea.hbm %s1678_s8, 1024 }
  0x59   :  { %s90_s18 = sshll.u32 %s1437_s1, 4  ;;  %p1349_p12 = scmp.ne.s32.totalorder %s1678_s8, %s1348_s24  ;;  %s91_s18 = int_to_ptr.vmem [resolvable:$true] %s90_s18 }
  0x5a   :  { %p1352_p13 = scmp.lt.u32.totalorder %s1348_s24, %s1678_s8 }
  0x5c   :  { %p1354_p0 = pnand %p1352_p13, %p1349_p12 }
  0x5e   :  { %1357 = shalt.err (!%p1354_p0)
}
  0x5f   :  { %s1358_s29 = scalar_lea.vmem %s91_s18, 1024  ;;  %p1363_p2 = scmp.lt.s32.totalorder %s91_s18, %s91_s18 }
  0x60   :  { %p1359_p1 = scmp.ne.s32.totalorder %s91_s18, %s1358_s29  ;;  %p1364_p3 = scmp.lt.s32.totalorder %s1358_s29, %s1358_s29 }
  0x62   :  { %p1365_p4 = por %p1364_p3, %p1363_p2 }
  0x64   :  { %p1366_p5 = pnand %p1365_p4, %p1359_p1 }
  0x66   :  { %1369 = shalt.err (!%p1366_p5)
}
  0x67   :  { %s1438_s6 = smov 128   ;;  %s1439_s30 = smov 8  }
  0x68   :  { %96 = dma.hbm_to_vmem [thread:$0]  %s1678_s8, 1024, %s91_s18, [#allocation12], %s1438_s6, %s1438_s6, %s1439_s30  }
  0x69   :  { %1414 = dma.done.wait [#allocation3], 128  }
  0x6a   :  { %1415 = vsyncadd [#allocation3], 4294967168 }
  0x6b   :  { %1416 = dma.done.wait [#allocation6], 2048  }
  0x6c   :  { %1417 = vsyncadd [#allocation6], 4294965248 }
  0x6d   :  { %1418 = dma.done.wait [#allocation9], 25600  }
  0x6e   :  { %1419 = vsyncadd [#allocation9], 4294941696 }
  0x6f   :  { %1420 = dma.done.wait [#allocation12], 1024  }
  0x70   :  { %1421 = vsyncadd [#allocation12], 4294966272  ;;  %v1440_v0 = vmov 0.0   ;;  %v119_v1 = vld [vmem:[#allocation7 + $0x8] sm:$0xff]  ;;  %v121_v2 = vld [vmem:[#allocation7 + $0x18] sm:$0xff]  ;;  %vm148_vm0 = vcmask 1041408  }
  0x71   :  { %219 = vmatprep.mubr.f32.mxu0 %v1440_v0  ;;  %v118_v3 = vld [vmem:[#allocation7] sm:$0xff]  ;;  %v965_v4 = vpack.c.bf16 %v121_v2, %v119_v1  ;;  %v120_v5 = vld [vmem:[#allocation7 + $0x10] sm:$0xff]  ;;  %v123_v6 = vld [vmem:[#allocation7 + $0x28] sm:$0xff]  ;;  %vm144_vm1 = vcmask 408576   ;;  %v1441_v52 = vmov 0.0|0.0   ;;  %vm327_vm2 = vcmask 523264  }
  0x72   :  { %v125_v7 = vld [vmem:[#allocation7 + $0x38] sm:$0xff]  ;;  %v967_v8 = vpack.c.bf16 %v120_v5, %v118_v3  ;;  %v122_v10 = vld [vmem:[#allocation7 + $0x20] sm:$0xff]  ;;  %v124_v11 = vld [vmem:[#allocation7 + $0x30] sm:$0xff]  ;;  %vm1442_vm7 = vmmov 0   ;;  %s1443_s17 = smov [#allocation14]  }
  0x73   :  { %v969_v9 = vpack.c.bf16 %v125_v7, %v123_v6  ;;  %v127_v12 = vld [vmem:[#allocation7 + $0x48] sm:$0xff]  ;;  %966 = vmatprep.subr.bf16.mxu0 %v965_v4  ;;  %v129_v13 = vld [vmem:[#allocation7 + $0x58] sm:$0xff]  ;;  %v971_v14 = vpack.c.bf16 %v124_v11, %v122_v10  ;;  %v126_v15 = vld [vmem:[#allocation7 + $0x40] sm:$0xff] }
  0x74   :  { %968 = vmatpush1.bf16.msra.mxu0 %v967_v8  ;;  %v128_v16 = vld [vmem:[#allocation7 + $0x50] sm:$0xff]  ;;  %v973_v17 = vpack.c.bf16 %v129_v13, %v127_v12  ;;  %v239_v18 = vld [vmem:[#allocation8 + $0x8] sm:$0xff]  ;;  %v241_v22 = vld [vmem:[#allocation8 + $0x18] sm:$0xff] }
  0x75   :  { %970 = vmatprep.subr.bf16.mxu0 %v969_v9  ;;  %v242_v19 = vld [vmem:[#allocation8 + $0x20] sm:$0xff]  ;;  %v245_v24 = vld [vmem:[#allocation8 + $0x38] sm:$0xff]  ;;  %v248_v25 = vld [vmem:[#allocation8 + $0x50] sm:$0xff]  ;;  %v975_v27 = vpack.c.bf16 %v128_v16, %v126_v15 }
  0x76   :  { %v238_v20 = vld [vmem:[#allocation8] sm:$0xff]  ;;  %v977_v21 = vpack.c.bf16 %v242_v19, %v239_v18  ;;  %v244_v26 = vld [vmem:[#allocation8 + $0x30] sm:$0xff]  ;;  %v981_v28 = vpack.c.bf16 %v248_v25, %v245_v24  ;;  %v247_v29 = vld [vmem:[#allocation8 + $0x48] sm:$0xff] }
  0x77   :  { %v979_v23 = vpack.c.bf16 %v241_v22, %v238_v20  ;;  %v983_v30 = vpack.c.bf16 %v247_v29, %v244_v26  ;;  %v251_v31 = vld [vmem:[#allocation8 + $0x68] sm:$0xff]  ;;  %v254_v32 = vld [vmem:[#allocation8 + $0x80] sm:$0xff]  ;;  %v131_v33 = vld [vmem:[#allocation7 + $0x68] sm:$0x3] }
  0x78   :  { %972 = vmatpush1.bf16.msra.mxu0 %v971_v14  ;;  %978 = vmatprep.subr.bf16.mxu1 %v977_v21  ;;  %v240_v34 = vld [vmem:[#allocation8 + $0x10] sm:$0xff]  ;;  %v985_v35 = vpack.c.bf16 %v254_v32, %v251_v31  ;;  %v243_v36 = vld [vmem:[#allocation8 + $0x28] sm:$0xff]  ;;  %v250_v37 = vld [vmem:[#allocation8 + $0x60] sm:$0xff] }
  0x79   :  { %974 = vmatprep.subr.bf16.mxu0 %v973_v17  ;;  %980 = vmatpush1.bf16.msra.mxu1 %v979_v23  ;;  %v253_v38 = vld [vmem:[#allocation8 + $0x78] sm:$0xff]  ;;  %v260_v40 = vld [vmem:[#allocation8 + $0xb0] sm:$0xff]  ;;  %v1026_v43 = vpack.c.bf16 %v243_v36, %v240_v34  ;;  %v246_v44 = vld [vmem:[#allocation8 + $0x40] sm:$0xff] }
  0x7a   :  { %982 = vmatprep.subr.bf16.mxu1 %v981_v28  ;;  %v257_v39 = vld [vmem:[#allocation8 + $0x98] sm:$0xff]  ;;  %v130_v41 = vld [vmem:[#allocation7 + $0x60] sm:$0x3]  ;;  %v987_v45 = vpack.c.bf16 %v253_v38, %v250_v37  ;;  %v259_v49 = vld [vmem:[#allocation8 + $0xa8] sm:$0xff] }
  0x7b   :  { %v117_v42 = vld [vmem:[#allocation2] sm:$0xff]  ;;  %v989_v47 = vpack.c.bf16 %v260_v40, %v257_v39  ;;  %v256_v48 = vld [vmem:[#allocation8 + $0x90] sm:$0xff]  ;;  %v263_v50 = vld [vmem:[#allocation8 + $0xc8] sm:$0xff] }
  0x7c   :  { %976 = vmatpush1.bf16.msra.mxu0 %v975_v27  ;;  %v249_v46 = vld [vmem:[#allocation8 + $0x58] sm:$0xff]  ;;  %v266_v51 = vld [vmem:[#allocation8 + $0xe0] sm:$0xff]  ;;  %v252_v54 = vld [vmem:[#allocation8 + $0x70] sm:$0xff]  ;;  %v991_v55 = vpack.c.bf16 %v259_v49, %v256_v48 }
  0x7d   :  { %923 = vmatprep.subr.msk.mxu0 %vm148_vm0, %v131_v33  ;;  %984 = vmatpush1.bf16.msra.mxu1 %v983_v30  ;;  %v1029_v53 = vpack.c.bf16 %v249_v46, %v246_v44  ;;  %v255_v56 = vld [vmem:[#allocation8 + $0x88] sm:$0xff]  ;;  %v993_v57 = vpack.c.bf16 %v266_v51, %v263_v50  ;;  %v262_v58 = vld [vmem:[#allocation8 + $0xc0] sm:$0xff]  ;;  %v265_v59 = vld [vmem:[#allocation8 + $0xd8] sm:$0xff] }
  0x7e   :  { %986 = vmatprep.subr.bf16.mxu1 %v985_v35  ;;  %v269_v60 = vld [vmem:[#allocation8 + $0xf8] sm:$0xff]  ;;  %v272_v61 = vld [vmem:[#allocation8 + $0x110] sm:$0xff]  ;;  %v1032_v62 = vpack.c.bf16 %v255_v56, %v252_v54  ;;  %v258_v63 = vld [vmem:[#allocation8 + $0xa0] sm:$0xff]  ;;  %v995_v1 = vpack.c.bf16 %v265_v59, %v262_v58 }
  0x7f   :  { %v261_v2 = vld [vmem:[#allocation8 + $0xb8] sm:$0xff]  ;;  %v997_v3 = vpack.c.bf16 %v272_v61, %v269_v60  ;;  %v268_v4 = vld [vmem:[#allocation8 + $0xf0] sm:$0xff]  ;;  %v271_v5 = vld [vmem:[#allocation8 + $0x108] sm:$0xff] }
  0x80   :  { %924 = vmatpush1.msk.msra.mxu0 %vm148_vm0, %v130_v41  ;;  %v275_v6 = vld [vmem:[#allocation8 + $0x128] sm:$0xff]  ;;  %v278_v7 = vld [vmem:[#allocation8 + $0x140] sm:$0xff]  ;;  %v1035_v8 = vpack.c.bf16 %v261_v2, %v258_v63  ;;  %v999_v9 = vpack.c.bf16 %v271_v5, %v268_v4  ;;  %v264_v10 = vld [vmem:[#allocation8 + $0xd0] sm:$0xff] }
  0x81   :  { %925 = vmatmul.mubr.msk.f32.vlgmr.msra.gmra.mrb[0].mxu0 %vm144_vm1, %v117_v42  ;;  %1025 = vmatprep.subr.bf16.mxu0 %v1441_v52  ;;  %v267_v11 = vld [vmem:[#allocation8 + $0xe8] sm:$0xff]  ;;  %v1001_v12 = vpack.c.bf16 %v278_v7, %v275_v6  ;;  %v270_v14 = vld [vmem:[#allocation8 + $0x100] sm:$0xff]  ;;  %v273_v15 = vld [vmem:[#allocation8 + $0x118] sm:$0xff] }
  0x82   :  { %1027 = vmatpush1.bf16.msra.mxu0 %v1026_v43  ;;  %988 = vmatpush1.bf16.msra.mxu1 %v987_v45  ;;  %v1038_v13 = vpack.c.bf16 %v267_v11, %v264_v10  ;;  %v1041_v16 = vpack.c.bf16 %v273_v15, %v270_v14  ;;  %v274_v17 = vld [vmem:[#allocation8 + $0x120] sm:$0xff]  ;;  %v277_v18 = vld [vmem:[#allocation8 + $0x138] sm:$0xff]  ;;  %v276_v19 = vld [vmem:[#allocation8 + $0x130] sm:$0xff] }
  0x83   :  { %1028 = vmatprep.subr.bf16.mxu0 %v1441_v52  ;;  %990 = vmatprep.subr.bf16.mxu1 %v989_v47  ;;  %v1003_v20 = vpack.c.bf16 %v277_v18, %v274_v17  ;;  %v279_v21 = vld [vmem:[#allocation8 + $0x148] sm:$0xff]  ;;  %v281_v23 = vld [vmem:[#allocation8 + $0x158] sm:$0xff]  ;;  %v284_v24 = vld [vmem:[#allocation8 + $0x170] sm:$0xff] }
  0x84   :  { %v1044_v22 = vpack.c.bf16 %v279_v21, %v276_v19  ;;  %v1005_v25 = vpack.c.bf16 %v284_v24, %v281_v23  ;;  %v280_v26 = vld [vmem:[#allocation8 + $0x150] sm:$0xff]  ;;  %v283_v27 = vld [vmem:[#allocation8 + $0x168] sm:$0xff]  ;;  %v282_v28 = vld [vmem:[#allocation8 + $0x160] sm:$0xff] }
  0x85   :  { %v1007_v29 = vpack.c.bf16 %v283_v27, %v280_v26  ;;  %v285_v30 = vld [vmem:[#allocation8 + $0x178] sm:$0xff]  ;;  %v287_v32 = vld [vmem:[#allocation8 + $0x188] sm:$0xff]  ;;  %v290_v33 = vld [vmem:[#allocation8 + $0x1a0] sm:$0xff] }
  0x86   :  { %1030 = vmatpush1.bf16.msra.mxu0 %v1029_v53  ;;  %992 = vmatpush1.bf16.msra.mxu1 %v991_v55  ;;  %v1047_v31 = vpack.c.bf16 %v285_v30, %v282_v28  ;;  %v1009_v34 = vpack.c.bf16 %v290_v33, %v287_v32  ;;  %v286_v35 = vld [vmem:[#allocation8 + $0x180] sm:$0xff]  ;;  %v289_v36 = vld [vmem:[#allocation8 + $0x198] sm:$0xff]  ;;  %v288_v37 = vld [vmem:[#allocation8 + $0x190] sm:$0xff] }
  0x87   :  { %1031 = vmatprep.subr.bf16.mxu0 %v1441_v52  ;;  %994 = vmatprep.subr.bf16.mxu1 %v993_v57  ;;  %v1011_v38 = vpack.c.bf16 %v289_v36, %v286_v35  ;;  %v291_v39 = vld [vmem:[#allocation8 + $0x1a8] sm:$0xff]  ;;  %v293_v41 = vld [vmem:[#allocation8 + $0x1b8] sm:$0xff]  ;;  %v296_v42 = vld [vmem:[#allocation8 + $0x1d0] sm:$0xff] }
  0x88   :  { %v1050_v40 = vpack.c.bf16 %v291_v39, %v288_v37  ;;  %v292_v43 = vld [vmem:[#allocation8 + $0x1b0] sm:$0xff]  ;;  %v1013_v44 = vpack.c.bf16 %v296_v42, %v293_v41  ;;  %v295_v45 = vld [vmem:[#allocation8 + $0x1c8] sm:$0xff]  ;;  %v294_v46 = vld [vmem:[#allocation8 + $0x1c0] sm:$0xff] }
  0x89   :  { %v297_v47 = vld [vmem:[#allocation8 + $0x1d8] sm:$0xff]  ;;  %v1015_v48 = vpack.c.bf16 %v295_v45, %v292_v43  ;;  %v299_v50 = vld [vmem:[#allocation8 + $0x1e8] sm:$0xff]  ;;  %v302_v51 = vld [vmem:[#allocation8 + $0x200] sm:$0xff] }
  0x8a   :  { %1033 = vmatpush1.bf16.msra.mxu0 %v1032_v62  ;;  %996 = vmatpush1.bf16.msra.mxu1 %v995_v1  ;;  %v1053_v49 = vpack.c.bf16 %v297_v47, %v294_v46  ;;  %v298_v53 = vld [vmem:[#allocation8 + $0x1e0] sm:$0xff]  ;;  %v1017_v54 = vpack.c.bf16 %v302_v51, %v299_v50  ;;  %v301_v55 = vld [vmem:[#allocation8 + $0x1f8] sm:$0xff]  ;;  %v300_v56 = vld [vmem:[#allocation8 + $0x1f0] sm:$0xff] }
  0x8b   :  { %1034 = vmatprep.subr.bf16.mxu0 %v1441_v52  ;;  %998 = vmatprep.subr.bf16.mxu1 %v997_v3  ;;  %v303_v57 = vld [vmem:[#allocation8 + $0x208] sm:$0xff]  ;;  %v1019_v58 = vpack.c.bf16 %v301_v55, %v298_v53  ;;  %v305_v59 = vld [vmem:[#allocation8 + $0x218] sm:$0xff]  ;;  %v308_v60 = vld [vmem:[#allocation8 + $0x230] sm:$0xff] }
  0x8c   :  { %v1056_v61 = vpack.c.bf16 %v303_v57, %v300_v56  ;;  %v1021_v62 = vpack.c.bf16 %v308_v60, %v305_v59  ;;  %v304_v63 = vld [vmem:[#allocation8 + $0x210] sm:$0xff]  ;;  %v307_v1 = vld [vmem:[#allocation8 + $0x228] sm:$0xff]  ;;  %v306_v2 = vld [vmem:[#allocation8 + $0x220] sm:$0xff] }
  0x8d   :  { %v309_v3 = vld [vmem:[#allocation8 + $0x238] sm:$0xff]  ;;  %v1023_v4 = vpack.c.bf16 %v307_v1, %v304_v63  ;;  %v491_v6 = vld [vmem:[#allocation10 + $0x8] sm:$0xff]  ;;  %v490_v27 = vld [vmem:[#allocation10] sm:$0xff] }
  0x8e   :  { %1036 = vmatpush1.bf16.msra.mxu0 %v1035_v8  ;;  %1000 = vmatpush1.bf16.msra.mxu1 %v999_v9  ;;  %v1059_v5 = vpack.c.bf16 %v309_v3, %v306_v2  ;;  %v495_v7 = vld [vmem:[#allocation10 + $0x28] sm:$0xff]  ;;  %v493_v9 = vld [vmem:[#allocation10 + $0x18] sm:$0xff]  ;;  %v494_v28 = vld [vmem:[#allocation10 + $0x20] sm:$0xff] }
  0x8f   :  { %1037 = vmatprep.subr.bf16.mxu0 %v1441_v52  ;;  %1002 = vmatprep.subr.bf16.mxu1 %v1001_v12  ;;  %v1061_v8 = vpack.c.bf16 %v495_v7, %v491_v6  ;;  %v497_v10 = vld [vmem:[#allocation10 + $0x38] sm:$0xff]  ;;  %v134_v12 = vlaneseq  ;;  %v492_v30 = vld [vmem:[#allocation10 + $0x10] sm:$0xff]  ;;  %v499_v32 = vld [vmem:[#allocation10 + $0x48] sm:$0xff]  ;;  %v1063_v39 = vpack.c.bf16 %v494_v28, %v490_v27 }
  0x90   :  { %v1125_v11 = vpack.c.bf16 %v497_v10, %v493_v9  ;;  %v132_v15 = vld [vmem:[%s1673_s3] sm:$0x3]  ;;  %v503_v35 = vld [vmem:[#allocation10 + $0x68] sm:$0xff]  ;;  %v498_v41 = vld [vmem:[#allocation10 + $0x40] sm:$0xff] }
  0x91   :  { %v501_v36 = vld [vmem:[#allocation10 + $0x58] sm:$0xff]  ;;  %v502_v42 = vld [vmem:[#allocation10 + $0x60] sm:$0xff]  ;;  %v500_v46 = vld [vmem:[#allocation10 + $0x50] sm:$0xff] }
  0x92   :  { %1039 = vmatpush1.bf16.msra.mxu0 %v1038_v13  ;;  %1004 = vmatpush1.bf16.msra.mxu1 %v1003_v20  ;;  %v1606_v13 = vshrl.u32 %v134_v12, 7  ;;  %v505_v37 = vld [vmem:[#allocation10 + $0x78] sm:$0xff]  ;;  %v504_v47 = vld [vmem:[#allocation10 + $0x70] sm:$0xff]  ;;  %v511_v50 = vld [vmem:[#allocation10 + $0xa8] sm:$0xff] }
  0x93   :  { %1040 = vmatprep.subr.bf16.mxu0 %v1441_v52  ;;  %1006 = vmatprep.subr.bf16.mxu1 %v1005_v25  ;;  %v1129_v45 = vpack.c.bf16 %v505_v37, %v501_v36  ;;  %v509_v51 = vld [vmem:[#allocation10 + $0x98] sm:$0xff]  ;;  %v1131_v55 = vpack.c.bf16 %v504_v47, %v500_v46  ;;  %v506_v56 = vld [vmem:[#allocation10 + $0x80] sm:$0xff]  ;;  %v508_v60 = vld [vmem:[#allocation10 + $0x90] sm:$0xff] }
  0x94   :  { %v1609_v14 = vsub.s32 0, %v1606_v13  ;;  %v513_v53 = vld [vmem:[#allocation10 + $0xb8] sm:$0xff]  ;;  %v510_v57 = vld [vmem:[#allocation10 + $0xa0] sm:$0xff]  ;;  %v519_v63 = vld [vmem:[#allocation10 + $0xe8] sm:$0xff] }
  0x95   :  { %v1133_v59 = vpack.c.bf16 %v513_v53, %v509_v51  ;;  %v517_v1 = vld [vmem:[#allocation10 + $0xd8] sm:$0xff]  ;;  %v1071_v3 = vpack.c.bf16 %v510_v57, %v506_v56  ;;  %v518_v6 = vld [vmem:[#allocation10 + $0xe0] sm:$0xff]  ;;  %v516_v9 = vld [vmem:[#allocation10 + $0xd0] sm:$0xff] }
  0x96   :  { %1042 = vmatpush1.bf16.msra.mxu0 %v1041_v16  ;;  %1008 = vmatpush1.bf16.msra.mxu1 %v1007_v29  ;;  %v1615_v16 = vsub.s32 1, %v1606_v13  ;;  %v137_v17 = vrot.slane %v132_v15, %v1609_v14  ;;  %v521_v2 = vld [vmem:[#allocation10 + $0xf8] sm:$0xff]  ;;  %v520_v10 = vld [vmem:[#allocation10 + $0xf0] sm:$0xff]  ;;  %v527_v12 = vld [vmem:[#allocation10 + $0x128] sm:$0xff] }
  0x97   :  { %1043 = vmatprep.subr.bf16.mxu0 %v1441_v52  ;;  %1010 = vmatprep.subr.bf16.mxu1 %v1009_v34  ;;  %v535_v27 = vld [vmem:[#allocation10 + $0x168] sm:$0xff]  ;;  %v533_v28 = vld [vmem:[#allocation10 + $0x158] sm:$0xff]  ;;  %v532_v36 = vld [vmem:[#allocation10 + $0x150] sm:$0xff] }
  0x98   :  { %v141_v18 = vrot.slane %v132_v15, %v1615_v16  ;;  %v525_v15 = vld [vmem:[#allocation10 + $0x118] sm:$0xff]  ;;  %v536_v37 = vld [vmem:[#allocation10 + $0x170] sm:$0xff]  ;;  %v551_v51 = vld [vmem:[#allocation10 + $0x1e8] sm:$0xff] }
  0x99   :  { %v549_v53 = vld [vmem:[#allocation10 + $0x1d8] sm:$0xff]  ;;  %v546_v57 = vld [vmem:[#allocation10 + $0x1c0] sm:$0xff] }
  0x9a   :  { %1045 = vmatpush1.bf16.msra.mxu0 %v1044_v22  ;;  %1012 = vmatpush1.bf16.msra.mxu1 %v1011_v38 }
  0x9b   :  { %1046 = vmatprep.subr.bf16.mxu0 %v1441_v52  ;;  %1014 = vmatprep.subr.bf16.mxu1 %v1013_v44  ;;  %v1065_v44 = vpack.c.bf16 %v503_v35, %v499_v32  ;;  %v530_v32 = vld [vmem:[#allocation10 + $0x140] sm:$0xff] }
  0x9e   :  { %1048 = vmatpush1.bf16.msra.mxu0 %v1047_v31  ;;  %1016 = vmatpush1.bf16.msra.mxu1 %v1015_v48  ;;  %v496_v31 = vld [vmem:[#allocation10 + $0x30] sm:$0xff]  ;;  %v507_v48 = vld [vmem:[#allocation10 + $0x88] sm:$0xff] }
  0x9f   :  { %1049 = vmatprep.subr.bf16.mxu0 %v1441_v52  ;;  %1018 = vmatprep.subr.bf16.mxu1 %v1017_v54  ;;  %v1067_v54 = vpack.c.bf16 %v502_v42, %v498_v41  ;;  %v545_v41 = vld [vmem:[#allocation10 + $0x1b8] sm:$0xff] }
  0xa2   :  { %1051 = vmatpush1.bf16.msra.mxu0 %v1050_v40  ;;  %1020 = vmatpush1.bf16.msra.mxu1 %v1019_v58  ;;  %v1127_v40 = vpack.c.bf16 %v496_v31, %v492_v30  ;;  %v1069_v58 = vpack.c.bf16 %v511_v50, %v507_v48  ;;  %v540_v48 = vld [vmem:[#allocation10 + $0x190] sm:$0xff]  ;;  %v547_v50 = vld [vmem:[#allocation10 + $0x1c8] sm:$0xff] }
  0xa3   :  { %1052 = vmatprep.subr.bf16.mxu0 %v1441_v52  ;;  %1022 = vmatprep.subr.bf16.mxu1 %v1021_v62  ;;  %v515_v62 = vld [vmem:[#allocation10 + $0xc8] sm:$0xff] }
  0xa4   :  { %v1073_v7 = vpack.c.bf16 %v519_v63, %v515_v62  ;;  %v552_v62 = vld [vmem:[#allocation10 + $0x1f0] sm:$0xff]  ;;  %v555_v63 = vld [vmem:[#allocation10 + $0x208] sm:$0xff] }
  0xa6   :  { %1054 = vmatpush1.bf16.msra.mxu0 %v1053_v49  ;;  %1024 = vmatpush1.bf16.msra.mxu1 %v1023_v4 }
  0xa7   :  { %1055 = vmatprep.subr.bf16.mxu0 %v1441_v52  ;;  %1062 = vmatprep.subr.bf16.mxu1 %v1061_v8  ;;  %v1137_v8 = vpack.c.bf16 %v521_v2, %v517_v1  ;;  %v559_v1 = vld [vmem:[#allocation10 + $0x228] sm:$0xff]  ;;  %v557_v2 = vld [vmem:[#allocation10 + $0x218] sm:$0xff] }
  0xaa   :  { %1057 = vmatpush1.bf16.msra.mxu0 %v1056_v61  ;;  %v512_v61 = vld [vmem:[#allocation10 + $0xb0] sm:$0xff] }
  0xab   :  { %1058 = vmatprep.subr.bf16.mxu0 %v1441_v52  ;;  %v1135_v4 = vpack.c.bf16 %v512_v61, %v508_v60  ;;  %v548_v61 = vld [vmem:[#allocation10 + $0x1d0] sm:$0xff] }
  0xae   :  { %1060 = vmatpush1.bf16.msra.mxu0 %v1059_v5  ;;  %v514_v5 = vld [vmem:[#allocation10 + $0xc0] sm:$0xff] }
  0xaf   :  { %1126 = vmatprep.subr.bf16.mxu0 %v1125_v11  ;;  %v523_v11 = vld [vmem:[#allocation10 + $0x108] sm:$0xff] }
 0x154   :  { %v221_v19 = vpop.f32.mrb[0].mxu0 }
 0x155   :  { %v222_v20 = vadd.f32 %v221_v19, %v137_v17  ;;  %v223_v21 = vpop.f32.mrb[1].mxu0  ;;  %v529_v17 = vld [vmem:[#allocation10 + $0x138] sm:$0xff]  ;;  %v1139_v19 = vpack.c.bf16 %v520_v10, %v516_v9  ;;  %v556_v10 = vld [vmem:[#allocation10 + $0x210] sm:$0xff] }
 0x156   :  { %v224_v22 = vadd.f32 %v223_v21, %v141_v18  ;;  %v1075_v18 = vpack.c.bf16 %v518_v6, %v514_v5  ;;  %v526_v21 = vld [vmem:[#allocation10 + $0x120] sm:$0xff]  ;;  %v1155_v5 = vpack.c.bf16 %v552_v62, %v548_v61  ;;  %v593_v61 = vld [vmem:[#allocation10 + $0x338] sm:$0xff]  ;;  %v588_v62 = vld [vmem:[#allocation10 + $0x310] sm:$0xff] }
 0x157   :  { %v228_v23 = vmin.f32 %v222_v20, 0.0  ;;  %vm226_vm4 = vcmp.gt.f32.partialorder %v222_v20, 0.0  ;;  %v554_v6 = vld [vmem:[#allocation10 + $0x200] sm:$0xff] }
 0x158   :  { %v229_v24 = vmin.f32 %v224_v22, 0.0  ;;  %vm227_vm3 = vcmp.gt.f32.partialorder %v224_v22, 0.0 }
 0x159   :  { %v230_v25 = vmul.f32 1.442695, %v228_v23  ;;  %v1141_v23 = vpack.c.bf16 %v529_v17, %v525_v15  ;;  %v567_v15 = vld [vmem:[#allocation10 + $0x268] sm:$0xff]  ;;  %v565_v17 = vld [vmem:[#allocation10 + $0x258] sm:$0xff] }
 0x15a   :  { %v232_v26 = vmul.f32 1.442695, %v229_v24  ;;  %v524_v24 = vld [vmem:[#allocation10 + $0x110] sm:$0xff] }
 0x15b   :  { %1220 = vpow2.f32 %v230_v25  ;;  %v528_v25 = vld [vmem:[#allocation10 + $0x130] sm:$0xff] }
 0x15c   :  { %1222 = vpow2.f32 %v232_v26  ;;  %v531_v26 = vld [vmem:[#allocation10 + $0x148] sm:$0xff]  ;;  %v1143_v31 = vpack.c.bf16 %v528_v25, %v524_v24  ;;  %v564_v25 = vld [vmem:[#allocation10 + $0x250] sm:$0xff] }
 0x165   :  { %v1221_v29 = vpop.eup %1220 }
 0x166   :  { %v1223_v33 = vpop.eup %1222  ;;  %v926_v34 = vadd.f32 -1.0, %v1221_v29  ;;  %v537_v29 = vld [vmem:[#allocation10 + $0x178] sm:$0xff] }
 0x167   :  { %v927_v38 = vadd.f32 -1.0, %v1223_v33  ;;  %v534_v33 = vld [vmem:[#allocation10 + $0x160] sm:$0xff]  ;;  %v1145_v35 = vpack.c.bf16 %v537_v29, %v533_v28  ;;  %v575_v28 = vld [vmem:[#allocation10 + $0x2a8] sm:$0xff]  ;;  %v573_v29 = vld [vmem:[#allocation10 + $0x298] sm:$0xff] }
 0x168   :  { %v236_v49 = vsel %vm226_vm4, %v222_v20, %v926_v34  ;;  %v522_v20 = vld [vmem:[#allocation10 + $0x100] sm:$0xff]  ;;  %v1081_v34 = vpack.c.bf16 %v535_v27, %v531_v26  ;;  %v1083_v42 = vpack.c.bf16 %v534_v33, %v530_v32  ;;  %v568_v26 = vld [vmem:[#allocation10 + $0x270] sm:$0xff]  ;;  %v571_v27 = vld [vmem:[#allocation10 + $0x288] sm:$0xff] }
 0x169   :  { %v237_v43 = vsel %vm227_vm3, %v224_v22, %v927_v38  ;;  %v1077_v22 = vpack.c.bf16 %v527_v12, %v523_v11  ;;  %v1079_v30 = vpack.c.bf16 %v526_v21, %v522_v20  ;;  %v539_v38 = vld [vmem:[#allocation10 + $0x188] sm:$0xff]  ;;  %v560_v11 = vld [vmem:[#allocation10 + $0x230] sm:$0xff]  ;;  %v562_v21 = vld [vmem:[#allocation10 + $0x240] sm:$0xff]  ;;  %v1163_v32 = vpack.c.bf16 %v568_v26, %v564_v25 }
 0x16a   :  { %928 = vmatprep.mubr.msk.f32.mxu1 %vm327_vm2, %v237_v43  ;;  %929 = vmatprep.mubr.msk.f32.mxu0 %vm327_vm2, %v237_v43  ;;  %v1147_v43 = vpack.c.bf16 %v536_v37, %v532_v36  ;;  %v563_v12 = vld [vmem:[#allocation10 + $0x248] sm:$0xff]  ;;  %v1159_v20 = vpack.c.bf16 %v560_v11, %v556_v10  ;;  %v1101_v33 = vpack.c.bf16 %v575_v28, %v571_v27  ;;  %v601_v10 = vld [vmem:[#allocation10 + $0x378] sm:$0xff]  ;;  %v596_v11 = vld [vmem:[#allocation10 + $0x350] sm:$0xff] }
 0x16b   :  { %396 = vmatmul.mubr.f32.vlgmr.msra.gmra.mrb[0].mxu1 %v236_v49  ;;  %467 = vmatmul.mubr.f32.vlgmr.msra.gmra.mrb[2].mxu0 %v236_v49  ;;  %v544_v49 = vld [vmem:[#allocation10 + $0x1b0] sm:$0xff]  ;;  %v609_v25 = vld [vmem:[#allocation10 + $0x3b8] sm:$0xff] }
 0x16c   :  { %1064 = vmatpush1.bf16.msra.mxu1 %v1063_v39  ;;  %1128 = vmatpush1.bf16.msra.mxu0 %v1127_v40  ;;  %v543_v39 = vld [vmem:[#allocation10 + $0x1a8] sm:$0xff]  ;;  %v541_v40 = vld [vmem:[#allocation10 + $0x198] sm:$0xff]  ;;  %v1151_v56 = vpack.c.bf16 %v544_v49, %v540_v48  ;;  %v580_v49 = vld [vmem:[#allocation10 + $0x2d0] sm:$0xff] }
 0x16d   :  { %1066 = vmatprep.subr.bf16.mxu1 %v1065_v44  ;;  %1130 = vmatprep.subr.bf16.mxu0 %v1129_v45  ;;  %v538_v44 = vld [vmem:[#allocation10 + $0x180] sm:$0xff]  ;;  %v1085_v46 = vpack.c.bf16 %v543_v39, %v539_v38  ;;  %v1149_v47 = vpack.c.bf16 %v545_v41, %v541_v40  ;;  %v572_v38 = vld [vmem:[#allocation10 + $0x290] sm:$0xff]  ;;  %v579_v41 = vld [vmem:[#allocation10 + $0x2c8] sm:$0xff] }
 0x16e   :  { %v542_v45 = vld [vmem:[#allocation10 + $0x1a0] sm:$0xff]  ;;  %v576_v39 = vld [vmem:[#allocation10 + $0x2b0] sm:$0xff]  ;;  %v585_v48 = vld [vmem:[#allocation10 + $0x2f8] sm:$0xff] }
 0x16f   :  { %v1167_v40 = vpack.c.bf16 %v576_v39, %v572_v38  ;;  %v604_v26 = vld [vmem:[#allocation10 + $0x390] sm:$0xff] }
 0x170   :  { %1068 = vmatpush1.bf16.msra.mxu1 %v1067_v54  ;;  %1132 = vmatpush1.bf16.msra.mxu0 %v1131_v55  ;;  %v553_v54 = vld [vmem:[#allocation10 + $0x1f8] sm:$0xff]  ;;  %v1087_v55 = vpack.c.bf16 %v542_v45, %v538_v44  ;;  %v578_v44 = vld [vmem:[#allocation10 + $0x2c0] sm:$0xff]  ;;  %v608_v27 = vld [vmem:[#allocation10 + $0x3b0] sm:$0xff] }
 0x171   :  { %1070 = vmatprep.subr.bf16.mxu1 %v1069_v58  ;;  %1134 = vmatprep.subr.bf16.mxu0 %v1133_v59  ;;  %v550_v58 = vld [vmem:[#allocation10 + $0x1e0] sm:$0xff]  ;;  %v1089_v59 = vpack.c.bf16 %v551_v51, %v547_v50  ;;  %v1153_v60 = vpack.c.bf16 %v553_v54, %v549_v53  ;;  %v584_v50 = vld [vmem:[#allocation10 + $0x2f0] sm:$0xff]  ;;  %v587_v54 = vld [vmem:[#allocation10 + $0x308] sm:$0xff] }
 0x172   :  { %v582_v45 = vld [vmem:[#allocation10 + $0x2e0] sm:$0xff]  ;;  %v1171_v53 = vpack.c.bf16 %v584_v50, %v580_v49  ;;  %v612_v38 = vld [vmem:[#allocation10 + $0x3d0] sm:$0xff]  ;;  %v322_v50 = vsub.s32 2, %v1606_v13 }
 0x173   :  { %v616_v39 = vld [vmem:[#allocation10 + $0x3f0] sm:$0xff] }
 0x174   :  { %1072 = vmatpush1.bf16.msra.mxu1 %v1071_v3  ;;  %1136 = vmatpush1.bf16.msra.mxu0 %v1135_v4  ;;  %v561_v3 = vld [vmem:[#allocation10 + $0x238] sm:$0xff]  ;;  %v1091_v4 = vpack.c.bf16 %v550_v58, %v546_v57  ;;  %v586_v57 = vld [vmem:[#allocation10 + $0x300] sm:$0xff] }
 0x175   :  { %1074 = vmatprep.subr.bf16.mxu1 %v1073_v7  ;;  %1138 = vmatprep.subr.bf16.mxu0 %v1137_v8  ;;  %v558_v7 = vld [vmem:[#allocation10 + $0x220] sm:$0xff]  ;;  %v1093_v8 = vpack.c.bf16 %v559_v1, %v555_v63  ;;  %v1157_v9 = vpack.c.bf16 %v561_v3, %v557_v2  ;;  %v592_v63 = vld [vmem:[#allocation10 + $0x330] sm:$0xff]  ;;  %v595_v3 = vld [vmem:[#allocation10 + $0x348] sm:$0xff] }
 0x176   :  { %v590_v58 = vld [vmem:[#allocation10 + $0x320] sm:$0xff]  ;;  %v1175_v2 = vpack.c.bf16 %v592_v63, %v588_v62  ;;  %v783_v63 = vld [vmem:[#allocation11 + $0x8] sm:$0xff] }
 0x177   :  { %v782_v62 = vld [vmem:[#allocation11] sm:$0xff] }
 0x178   :  { %1076 = vmatpush1.bf16.msra.mxu1 %v1075_v18  ;;  %1140 = vmatpush1.bf16.msra.mxu0 %v1139_v19  ;;  %v569_v18 = vld [vmem:[#allocation10 + $0x278] sm:$0xff]  ;;  %v1095_v19 = vpack.c.bf16 %v558_v7, %v554_v6  ;;  %v594_v6 = vld [vmem:[#allocation10 + $0x340] sm:$0xff] }
 0x179   :  { %1078 = vmatprep.subr.bf16.mxu1 %v1077_v22  ;;  %1142 = vmatprep.subr.bf16.mxu0 %v1141_v23  ;;  %v566_v22 = vld [vmem:[#allocation10 + $0x260] sm:$0xff]  ;;  %v1097_v23 = vpack.c.bf16 %v567_v15, %v563_v12  ;;  %v1161_v24 = vpack.c.bf16 %v569_v18, %v565_v17  ;;  %v600_v12 = vld [vmem:[#allocation10 + $0x370] sm:$0xff]  ;;  %v603_v18 = vld [vmem:[#allocation10 + $0x388] sm:$0xff] }
 0x17a   :  { %v598_v7 = vld [vmem:[#allocation10 + $0x360] sm:$0xff]  ;;  %v1179_v17 = vpack.c.bf16 %v600_v12, %v596_v11  ;;  %v787_v11 = vld [vmem:[#allocation11 + $0x28] sm:$0xff] }
 0x17c   :  { %1080 = vmatpush1.bf16.msra.mxu1 %v1079_v30  ;;  %1144 = vmatpush1.bf16.msra.mxu0 %v1143_v31  ;;  %v577_v30 = vld [vmem:[#allocation10 + $0x2b8] sm:$0xff]  ;;  %v1099_v31 = vpack.c.bf16 %v566_v22, %v562_v21  ;;  %v602_v21 = vld [vmem:[#allocation10 + $0x380] sm:$0xff] }
 0x17d   :  { %1082 = vmatprep.subr.bf16.mxu1 %v1081_v34  ;;  %1146 = vmatprep.subr.bf16.mxu0 %v1145_v35  ;;  %v570_v34 = vld [vmem:[#allocation10 + $0x280] sm:$0xff]  ;;  %v1165_v36 = vpack.c.bf16 %v577_v30, %v573_v29  ;;  %v1183_v29 = vpack.c.bf16 %v608_v27, %v604_v26  ;;  %v611_v30 = vld [vmem:[#allocation10 + $0x3c8] sm:$0xff] }
 0x17e   :  { %v574_v35 = vld [vmem:[#allocation10 + $0x2a0] sm:$0xff] }
 0x17f   :  { %v1103_v37 = vpack.c.bf16 %v574_v35, %v570_v34  ;;  %v606_v22 = vld [vmem:[#allocation10 + $0x3a0] sm:$0xff]  ;;  %v613_v35 = vld [vmem:[#allocation10 + $0x3d8] sm:$0xff] }
 0x180   :  { %1084 = vmatpush1.bf16.msra.mxu1 %v1083_v42  ;;  %1148 = vmatpush1.bf16.msra.mxu0 %v1147_v43  ;;  %v583_v42 = vld [vmem:[#allocation10 + $0x2e8] sm:$0xff]  ;;  %v614_v34 = vld [vmem:[#allocation10 + $0x3e0] sm:$0xff] }
 0x181   :  { %1086 = vmatprep.subr.bf16.mxu1 %v1085_v46  ;;  %1150 = vmatprep.subr.bf16.mxu0 %v1149_v47  ;;  %v1105_v43 = vpack.c.bf16 %v583_v42, %v579_v41  ;;  %v581_v46 = vld [vmem:[#allocation10 + $0x2d8] sm:$0xff]  ;;  %v1107_v47 = vpack.c.bf16 %v582_v45, %v578_v44  ;;  %v1187_v41 = vpack.c.bf16 %v616_v39, %v612_v38 }
 0x182   :  { %v1169_v51 = vpack.c.bf16 %v585_v48, %v581_v46  ;;  %v310_v42 = vld [vmem:[%s1675_s5] sm:$0x7] }
 0x183   :  { %v319_v44 = vrot.slane %v310_v42, %v1615_v16 }
 0x184   :  { %1088 = vmatpush1.bf16.msra.mxu1 %v1087_v55  ;;  %1152 = vmatpush1.bf16.msra.mxu0 %v1151_v56  ;;  %v591_v55 = vld [vmem:[#allocation10 + $0x328] sm:$0xff] }
 0x185   :  { %1090 = vmatprep.subr.bf16.mxu1 %v1089_v59  ;;  %1154 = vmatprep.subr.bf16.mxu0 %v1153_v60  ;;  %v1109_v56 = vpack.c.bf16 %v591_v55, %v587_v54  ;;  %v589_v59 = vld [vmem:[#allocation10 + $0x318] sm:$0xff]  ;;  %v1111_v60 = vpack.c.bf16 %v590_v58, %v586_v57 }
 0x186   :  { %v1173_v1 = vpack.c.bf16 %v593_v61, %v589_v59 }
 0x188   :  { %1092 = vmatpush1.bf16.msra.mxu1 %v1091_v4  ;;  %1156 = vmatpush1.bf16.msra.mxu0 %v1155_v5  ;;  %v599_v4 = vld [vmem:[#allocation10 + $0x368] sm:$0xff] }
 0x189   :  { %1094 = vmatprep.subr.bf16.mxu1 %v1093_v8  ;;  %1158 = vmatprep.subr.bf16.mxu0 %v1157_v9  ;;  %v1113_v5 = vpack.c.bf16 %v599_v4, %v595_v3  ;;  %v597_v8 = vld [vmem:[#allocation10 + $0x358] sm:$0xff]  ;;  %v1115_v9 = vpack.c.bf16 %v598_v7, %v594_v6  ;;  %v1190_v4 = vpack.c.bf16 %v783_v63, %v782_v62  ;;  %v784_v6 = vld [vmem:[#allocation11 + $0x10] sm:$0xff] }
 0x18a   :  { %v1177_v15 = vpack.c.bf16 %v601_v10, %v597_v8  ;;  %v785_v7 = vld [vmem:[#allocation11 + $0x18] sm:$0xff]  ;;  %v786_v10 = vld [vmem:[#allocation11 + $0x20] sm:$0xff] }
 0x18b   :  { %v1196_v12 = vpack.c.bf16 %v787_v11, %v786_v10 }
 0x18c   :  { %1096 = vmatpush1.bf16.msra.mxu1 %v1095_v19  ;;  %1160 = vmatpush1.bf16.msra.mxu0 %v1159_v20  ;;  %v607_v19 = vld [vmem:[#allocation10 + $0x3a8] sm:$0xff] }
 0x18d   :  { %1098 = vmatprep.subr.bf16.mxu1 %v1097_v23  ;;  %1162 = vmatprep.subr.bf16.mxu0 %v1161_v24  ;;  %v1117_v20 = vpack.c.bf16 %v607_v19, %v603_v18  ;;  %v605_v23 = vld [vmem:[#allocation10 + $0x398] sm:$0xff]  ;;  %v1119_v24 = vpack.c.bf16 %v606_v22, %v602_v21 }
 0x18e   :  { %v1181_v28 = vpack.c.bf16 %v609_v25, %v605_v23 }
 0x190   :  { %1100 = vmatpush1.bf16.msra.mxu1 %v1099_v31  ;;  %1164 = vmatpush1.bf16.msra.mxu0 %v1163_v32  ;;  %v615_v31 = vld [vmem:[#allocation10 + $0x3e8] sm:$0xff] }
 0x191   :  { %1102 = vmatprep.subr.bf16.mxu1 %v1101_v33  ;;  %1166 = vmatprep.subr.bf16.mxu0 %v1165_v36  ;;  %v1121_v32 = vpack.c.bf16 %v615_v31, %v611_v30  ;;  %v610_v33 = vld [vmem:[#allocation10 + $0x3c0] sm:$0xff]  ;;  %v933_v31 = vld [vmem:[%s1679_s9] ss:$0 sm:$0xff] }
 0x192   :  { %v1123_v36 = vpack.c.bf16 %v614_v34, %v610_v33 }
 0x194   :  { %1104 = vmatpush1.bf16.msra.mxu1 %v1103_v37  ;;  %1168 = vmatpush1.bf16.msra.mxu0 %v1167_v40  ;;  %v617_v37 = vld [vmem:[#allocation10 + $0x3f8] sm:$0xff] }
 0x195   :  { %1106 = vmatprep.subr.bf16.mxu1 %v1105_v43  ;;  %1170 = vmatprep.subr.bf16.mxu0 %v1169_v51  ;;  %v1185_v40 = vpack.c.bf16 %v617_v37, %v613_v35  ;;  %v315_v43 = vrot.slane %v310_v42, %v1609_v14 }
 0x198   :  { %1108 = vmatpush1.bf16.msra.mxu1 %v1107_v47  ;;  %1172 = vmatpush1.bf16.msra.mxu0 %v1171_v53 }
 0x199   :  { %1110 = vmatprep.subr.bf16.mxu1 %v1109_v56  ;;  %1174 = vmatprep.subr.bf16.mxu0 %v1173_v1  ;;  %v323_v56 = vrot.slane %v310_v42, %v322_v50 }
 0x19c   :  { %1112 = vmatpush1.bf16.msra.mxu1 %v1111_v60  ;;  %1176 = vmatpush1.bf16.msra.mxu0 %v1175_v2 }
 0x19d   :  { %1114 = vmatprep.subr.bf16.mxu1 %v1113_v5  ;;  %1178 = vmatprep.subr.bf16.mxu0 %v1177_v15  ;;  %v788_v15 = vld [vmem:[#allocation11 + $0x30] sm:$0xff] }
 0x1a0   :  { %1116 = vmatpush1.bf16.msra.mxu1 %v1115_v9  ;;  %1180 = vmatpush1.bf16.msra.mxu0 %v1179_v17  ;;  %v1193_v9 = vpack.c.bf16 %v785_v7, %v784_v6  ;;  %v789_v17 = vld [vmem:[#allocation11 + $0x38] sm:$0xff] }
 0x1a1   :  { %1118 = vmatprep.subr.bf16.mxu1 %v1117_v20  ;;  %1182 = vmatprep.subr.bf16.mxu0 %v1181_v28  ;;  %v1199_v19 = vpack.c.bf16 %v789_v17, %v788_v15 }
 0x1a4   :  { %1120 = vmatpush1.bf16.msra.mxu1 %v1119_v24  ;;  %1184 = vmatpush1.bf16.msra.mxu0 %v1183_v29 }
 0x1a5   :  { %1122 = vmatprep.subr.bf16.mxu1 %v1121_v32  ;;  %1186 = vmatprep.subr.bf16.mxu0 %v1185_v40 }
 0x1a8   :  { %1124 = vmatpush1.bf16.msra.mxu1 %v1123_v36  ;;  %1188 = vmatpush1.bf16.msra.mxu0 %v1187_v41 }
 0x1a9   :  { %1189 = vmatprep.subr.bf16.mxu1 %v1441_v52 }
 0x23e   :  { %v397_v45 = vpop.f32.mrb[0].mxu1  ;;  %v468_v46 = vpop.f32.mrb[2].mxu0 }
 0x23f   :  { %v398_v47 = vadd.f32 %v397_v45, %v315_v43  ;;  %v399_v48 = vpop.f32.mrb[1].mxu1  ;;  %v470_v49 = vpop.f32.mrb[3].mxu0  ;;  %v469_v58 = vadd.f32 %v468_v46, %v323_v56 }
 0x240   :  { %v400_v51 = vadd.f32 %v399_v48, %v319_v44 }
 0x241   :  { %v475_v53 = vmin.f32 %v398_v47, 0.0  ;;  %v477_v59 = vmin.f32 %v469_v58, 0.0  ;;  %vm472_vm6 = vcmp.gt.f32.partialorder %v398_v47, 0.0  ;;  %vm474_vm8 = vcmp.gt.f32.partialorder %v469_v58, 0.0 }
 0x242   :  { %v476_v54 = vmin.f32 %v400_v51, 0.0  ;;  %vm473_vm5 = vcmp.gt.f32.partialorder %v400_v51, 0.0 }
 0x243   :  { %v478_v55 = vmul.f32 1.442695, %v475_v53  ;;  %v482_v61 = vmul.f32 1.442695, %v477_v59 }
 0x244   :  { %v480_v57 = vmul.f32 1.442695, %v476_v54 }
 0x245   :  { %1224 = vpow2.f32 %v478_v55 }
 0x246   :  { %1226 = vpow2.f32 %v480_v57 }
 0x247   :  { %1228 = vpow2.f32 %v482_v61 }
 0x24f   :  { %v1225_v60 = vpop.eup %1224 }
 0x250   :  { %v1227_v1 = vpop.eup %1226  ;;  %v930_v2 = vadd.f32 -1.0, %v1225_v60 }
 0x251   :  { %v931_v3 = vadd.f32 -1.0, %v1227_v1  ;;  %v1229_v18 = vpop.eup %1228 }
 0x252   :  { %v487_v8 = vsel %vm472_vm6, %v398_v47, %v930_v2  ;;  %v932_v20 = vadd.f32 -1.0, %v1229_v18 }
 0x253   :  { %v488_v5 = vsel %vm473_vm5, %v400_v51, %v931_v3 }
 0x254   :  { %704 = vmatprep.mubr.f32.mxu1 %v488_v5  ;;  %775 = vmatprep.mubr.f32.mxu0 %v488_v5  ;;  %v489_v21 = vsel %vm474_vm8, %v469_v58, %v932_v20 }
 0x255   :  { %705 = vmatmul.mubr.f32.vlgmr.msra.gmra.mrb[2].mxu1 %v487_v8  ;;  %776 = vmatmul.mubr.f32.vlgmr.msra.gmra.mrb[4].mxu0 %v487_v8 }
 0x256   :  { %1191 = vmatpush3.bf16.msra.mxu1 %v1190_v4  ;;  %962 = vmatprep.mubr.msk.f32.mxu1 %vm1442_vm7, %v1440_v0  ;;  %v618_v0 = vld [vmem:[%s1677_s7] sm:$0xf]  ;;  %s907_s7 = sshll.u32 %s1443_s17, 4  ;;  %s908_s7 = int_to_ptr.vmem [resolvable:$true] %s907_s7 }
 0x257   :  { %1192 = vmatprep.subr.bf16.mxu1 %v1441_v52  ;;  %v623_v22 = vrot.slane %v618_v0, %v1609_v14  ;;  %v627_v23 = vrot.slane %v618_v0, %v1615_v16  ;;  %s1370_s2 = scalar_lea.vmem %s908_s7, 128  ;;  %p1375_p7 = scmp.lt.s32.totalorder %s908_s7, %s908_s7 }
 0x258   :  { %p1371_p6 = scmp.ne.s32.totalorder %s908_s7, %s1370_s2  ;;  %p1376_p8 = scmp.lt.s32.totalorder %s1370_s2, %s1370_s2 }
 0x25a   :  { %1194 = vmatpush3.bf16.msra.mxu1 %v1193_v9  ;;  %p1377_p9 = por %p1376_p8, %p1375_p7 }
 0x25b   :  { %1195 = vmatprep.subr.bf16.mxu1 %v1441_v52 }
 0x25c   :  { %p1378_p10 = pnand %p1377_p9, %p1371_p6 }
 0x25e   :  { %1197 = vmatpush3.bf16.msra.mxu1 %v1196_v12 }
 0x25f   :  { %1198 = vmatprep.subr.bf16.mxu1 %v1441_v52 }
 0x262   :  { %1200 = vmatpush3.bf16.msra.mxu1 %v1199_v19 }
 0x265   :  { %963 = vmatmul.mubr.msk.f32.vlgmr.msra.gmra.mrb[4].mxu1 %vm327_vm2, %v489_v21 }
 0x328   :  { %v706_v24 = vpop.f32.mrb[2].mxu1  ;;  %v777_v25 = vpop.f32.mrb[4].mxu0 }
 0x329   :  { %v707_v26 = vadd.f32 %v706_v24, %v623_v22  ;;  %v708_v27 = vpop.f32.mrb[3].mxu1  ;;  %v779_v28 = vpop.f32.mrb[5].mxu0 }
 0x32a   :  { %v709_v52 = vadd.f32 %v708_v27, %v627_v23 }
 0x32b   :  { %v935_v29 = vmul.f32 -1.442695, %v707_v26 }
 0x32c   :  { %v936_v30 = vmul.f32 -1.442695, %v709_v52 }
 0x32d   :  { %1230 = vpow2.f32 %v935_v29 }
 0x32e   :  { %1232 = vpow2.f32 %v936_v30 }
 0x337   :  { %v1231_v32 = vpop.eup %1230 }
 0x338   :  { %v1233_v14 = vpop.eup %1232  ;;  %v876_v33 = vadd.f32 1.0, %v1231_v32  ;;  %v866_v16 = vpop.f32.mrb[4].mxu1 }
 0x339   :  { %v877_v34 = vadd.f32 1.0, %v1233_v14  ;;  %v867_v35 = vadd.f32 %v933_v31, %v866_v16  ;;  %v964_v36 = vpop.f32.mrb[5].mxu1 }
 0x33a   :  { %1234 = vrcp.f32 %v876_v33 }
 0x33b   :  { %1236 = vrcp.f32 %v877_v34  ;;  %890 = vst [vmem:[#allocation14] sm:$0xff] %v867_v35 }
 0x33c   :  { %1381 = shalt.err (!%p1378_p10)
}
 0x33d   :  { %s1382_s19 = scalar_lea.hbm %s1681_s11, 128 }
 0x33e   :  { %p1383_p11 = scmp.ne.s32.totalorder %s1681_s11, %s1382_s19  ;;  %p1386_p12 = scmp.lt.u32.totalorder %s1382_s19, %s1681_s11 }
 0x340   :  { %p1388_p13 = pnand %p1386_p12, %p1383_p11 }
 0x342   :  { %1391 = shalt.err (!%p1388_p13)
}
 0x343   :  { %910 = dma.vmem_to_hbm [thread:$0]  %s908_s7, 128, %s1681_s11, [#allocation15]   ;;  %v634_v37 = vsub.s32 3, %v1606_v13  ;;  %v631_v38 = vrot.slane %v618_v0, %v322_v50  ;;  %v882_v39 = vld [vmem:[#allocation5] sm:$0xff]  ;;  %v883_v41 = vld [vmem:[#allocation5 + $0x8] sm:$0xff] }
 0x344   :  { %v1235_v42 = vpop.eup %1234  ;;  %s1444_s0 = smov [#allocation13]  }
 0x345   :  { %v635_v40 = vrot.slane %v618_v0, %v634_v37  ;;  %v1237_v43 = vpop.eup %1236  ;;  %v778_v44 = vadd.f32 %v777_v25, %v631_v38  ;;  %v884_v45 = vmul.f32 %v1235_v42, %v882_v39  ;;  %s897_s25 = sshll.u32 %s1444_s0, 4  ;;  %s898_s25 = int_to_ptr.vmem [resolvable:$true] %s897_s25 }
 0x346   :  { %v885_v47 = vmul.f32 %v1237_v43, %v883_v41  ;;  %s1392_s11 = scalar_lea.vmem %s898_s25, 256  ;;  %p1397_p1 = scmp.lt.s32.totalorder %s898_s25, %s898_s25 }
 0x347   :  { %v780_v46 = vadd.f32 %v779_v28, %v635_v40  ;;  %v886_v48 = vadd.f32 %v884_v45, %v778_v44  ;;  %p1393_p0 = scmp.ne.s32.totalorder %s898_s25, %s1392_s11  ;;  %p1398_p2 = scmp.lt.s32.totalorder %s1392_s11, %s1392_s11 }
 0x349   :  { %v887_v49 = vadd.f32 %v885_v47, %v780_v46  ;;  %888 = vst [vmem:[#allocation13] sm:$0xff] %v886_v48  ;;  %p1399_p3 = por %p1398_p2, %p1397_p1 }
 0x34b   :  { %889 = vst [vmem:[#allocation13 + $0x8] sm:$0xff] %v887_v49  ;;  %p1400_p4 = pnand %p1399_p3, %p1393_p0 }
 0x34d   :  { %1403 = shalt.err (!%p1400_p4)
}
 0x34e   :  { %s1404_s29 = scalar_lea.hbm %s1680_s10, 256 }
 0x34f   :  { %p1405_p5 = scmp.ne.s32.totalorder %s1680_s10, %s1404_s29  ;;  %p1408_p6 = scmp.lt.u32.totalorder %s1404_s29, %s1680_s10 }
 0x351   :  { %p1410_p7 = pnand %p1408_p6, %p1405_p5 }
 0x353   :  { %1413 = shalt.err (!%p1410_p7)
}
 0x354   :  { %900 = dma.vmem_to_hbm [thread:$0]  %s898_s25, 256, %s1680_s10, [#allocation4]  }
 0x355   :  { %1422 = dma.done.wait [#allocation4], 256  }
 0x356   :  { %1423 = vsyncadd [#allocation4], 4294967040 }
 0x357   :  { %1424 = dma.done.wait [#allocation15], 128  }
 0x358   :  { %1425 = vsyncadd [#allocation15], 4294967168 }
 0x359   :  { %917 = vsyncpa [#allocation3], 1 }
 0x35a   :  { %918 = vsyncpa [#allocation6], 1 }
 0x35b   :  { %919 = vsyncpa [#allocation9], 1 }
 0x35c   :  { %920 = vsyncpa [#allocation12], 1 }
 0x35d   :  { %921 = vsyncpa [#allocation4], 1 }
 0x35e   :  { %922 = vsyncpa [#allocation15], 1 }

</bundles_post_ra>
